<compile_context>
chip_gen: v5e
topology: v5e:2x2
jax: 0.10.0
libtpu: 0.0.40
codegen_flags: <defaults>
</compile_context>

<pallas_src>
import jax
import jax.numpy as jnp
from jax import lax
from jax.experimental import pallas as pl
from jax.experimental.pallas import tpu as pltpu

BN_EPS = 1e-5

_VMEM_LIMIT_BYTES = 32 * 1024 * 1024  # explicit scoped-VMEM limit; safe on v5e/v6e (128 MiB) and v7x (64 MiB)
_VMEM_TILE_BUDGET = 12 * 1024 * 1024  # budget used when sizing blocks (double buffers + f32 temporaries)
_MIN_STEP_X_BYTES = 2 * 1024 * 1024   # target >= ~2 MiB of x per grid step (amortize per-step overhead)
_MIN_GRID_STEPS = 8                   # keep enough grid steps for DMA/compute overlap
_VPU_CIN_MAX = 8                      # Cin <= 8: MXU (K >= 128 native) is push-bound -> use VPU paths


def _choose_tiles(N, Cin, Cout, HW, x_itemsize, out_itemsize):
    """Pick (Nb, T, n_t): batch block, spatial tile (multiple of 128 or full HW), #spatial tiles.

    VMEM accounting covers double-buffered in/out blocks plus in-kernel f32 temporaries, so
    the picked blocks stay well under the explicit vmem_limit_bytes on every generation
    (v7x only has 64 MiB physical VMEM).
    """

    def vmem_per_t(nb):
        blocks = 2 * nb * (Cin * x_itemsize + Cout * out_itemsize)  # double-buffered blocks
        temps = 4 * nb * (2 * Cin + 2 * Cout)                       # f32 in-kernel temporaries
        return blocks + temps

    t_cap = max(128, (_VMEM_TILE_BUDGET // vmem_per_t(1)) // 128 * 128)
    if HW <= t_cap:
        T = HW                       # single full-width spatial tile (always a legal block)
    else:
        T = t_cap                    # multiple of 128; ragged tail handled by masking
    n_t = -(-HW // T)

    Nb = 1
    for d in range(2, N + 1):        # grow the batch block while per-step DMA is too small
        if N % d != 0:
            continue
        if Nb * Cin * T * x_itemsize >= _MIN_STEP_X_BYTES:
            break
        if (N // d) * n_t < _MIN_GRID_STEPS:
            break
        if vmem_per_t(d) * T > _VMEM_TILE_BUDGET:
            break
        Nb = d
    return Nb, T, n_t


# --------------------------------------------------------------------------------------
# Pass 1: batch statistics
# --------------------------------------------------------------------------------------
def _make_stats_kernel_vpu(cin, hw, t_size, mask_tail):
    """Tiny-Cin pass 1: per-channel sums of x and the Cin x Cin Gram of x, pure VPU work.

    sum_y and sum_y^2 are recovered host-side via sum_y = W sum_x, sum_y2 = diag(W G W^T),
    so no matmul (and no (Cout, T) intermediate) is ever formed in this pass.
    """

    def kernel(x_ref, xsum_ref, gram_ref):
        @pl.when(pl.program_id(1) == 0)
        def _init():
            xsum_ref[...] = jnp.zeros_like(xsum_ref)
            gram_ref[...] = jnp.zeros_like(gram_ref)

        xf = x_ref[...].astype(jnp.float32)                      # (Nb, Cin, T)
        if mask_tail:
            col = lax.broadcasted_iota(jnp.int32, xf.shape, 2)
            limit = hw - pl.program_id(1) * t_size
            xf = jnp.where(col < limit, xf, 0.0)

        xs = jnp.sum(xf, axis=0)                                 # (Cin, T)
        xsum_ref[...] += jnp.sum(xs, axis=-1, keepdims=True)[None]       # (1, Cin, 1)

        rows = []
        for k in range(cin):                                     # static unroll, Cin <= 8
            pk = jnp.sum(xf[:, k:k + 1, :] * xf, axis=0)         # (Cin, T)
            rows.append(jnp.sum(pk, axis=-1, keepdims=True))     # (Cin, 1) == Gram column k
        gram_ref[...] += jnp.concatenate(rows, axis=-1)[None]    # (1, Cin, Cin)

    return kernel


def _make_stats_kernel_mxu(nb, hw, t_size, mask_tail):
    """Larger-Cin pass 1: y = W @ x per batch row on the MXU; accumulate sum(y), sum(y^2)."""

    def kernel(x_ref, w_ref, ysum_ref, ysq_ref):
        @pl.when(pl.program_id(1) == 0)
        def _init():
            ysum_ref[...] = jnp.zeros_like(ysum_ref)
            ysq_ref[...] = jnp.zeros_like(ysq_ref)

        w = w_ref[...]                                           # (Cout, Cin), operand dtype
        if mask_tail:
            limit = hw - pl.program_id(1) * t_size

        s = jnp.zeros(ysum_ref.shape, jnp.float32)               # (1, Cout, 1)
        q = jnp.zeros(ysq_ref.shape, jnp.float32)
        for n in range(nb):                                      # static unroll; Nb is small
            xn = x_ref[n]                                        # (Cin, T)
            if mask_tail:
                col = lax.broadcasted_iota(jnp.int32, xn.shape, 1)
                xn = jnp.where(col < limit, xn, 0)
            y = jnp.dot(w, xn, preferred_element_type=jnp.float32)        # (Cout, T)
            s = s + jnp.sum(y, axis=-1, keepdims=True)[None]
            q = q + jnp.sum(y * y, axis=-1, keepdims=True)[None]
        ysum_ref[...] += s
        ysq_ref[...] += q

    return kernel


# --------------------------------------------------------------------------------------
# Pass 2: recompute the conv per tile and apply the folded BN affine
# --------------------------------------------------------------------------------------
def _make_norm_kernel_vpu(cin, cout):
    """Tiny-Cin pass 2: out[:, c, :] = sum_k Wfold[c, k] * x[:, k, :] + shift[c] as unrolled
    SMEM-scalar x vector multiply-adds (no MXU, no broadcast materialization)."""

    def kernel(x_ref, w_smem, shift_smem, o_ref):
        xf = x_ref[...].astype(jnp.float32)                      # (Nb, Cin, T)
        for c in range(cout):                                    # static unroll
            acc = w_smem[c, 0] * xf[:, 0, :]                     # (Nb, T)
            for k in range(1, cin):
                acc = acc + w_smem[c, k] * xf[:, k, :]
            o_ref[:, c, :] = (acc + shift_smem[c]).astype(o_ref.dtype)

    return kernel


def _make_norm_kernel_mxu(nb):
    """Larger-Cin pass 2: y = W @ x per batch row on the MXU, then the BN affine."""

    def kernel(x_ref, w_ref, scale_ref, shift_ref, o_ref):
        w = w_ref[...]                                           # (Cout, Cin), operand dtype
        scale = scale_ref[...]                                   # (Cout, 1) f32
        shift = shift_ref[...]                                   # (Cout, 1) f32
        for n in range(nb):
            y = jnp.dot(w, x_ref[n], preferred_element_type=jnp.float32)  # (Cout, T)
            o_ref[n] = (y * scale + shift).astype(o_ref.dtype)

    return kernel


# --------------------------------------------------------------------------------------
# Wrapper
# --------------------------------------------------------------------------------------
def conv11_op(x_nchw, weight, bias, gamma, beta):
    """Conv2d(Cin->Cout, kernel=1, stride=1, bias=True) + BatchNorm2d(Cout), training mode.

    x_nchw: (N, Cin, H, W); weight: (Cout, Cin, 1, 1); bias/gamma/beta: (Cout,).
    """
    del bias  # BatchNorm subtracts the per-channel batch mean, so the conv bias cancels exactly.
    # TODO(synk): BatchNorm running_mean/running_var buffer updates (training side effect,
    # not part of the forward output) are not emitted here.

    N, Cin, H, W = x_nchw.shape
    Cout = weight.shape[0]
    HW = H * W
    M = N * HW

    x3d = x_nchw.reshape(N, Cin, HW)                             # free reshape, no transpose
    w_f32 = weight.reshape(Cout, Cin).astype(jnp.float32)
    xsz = x_nchw.dtype.itemsize

    use_vpu = Cin <= _VPU_CIN_MAX
    Nb, T, n_t = _choose_tiles(N, Cin, Cout, HW, xsz, xsz)
    n_n = N // Nb
    grid = (n_n, n_t)
    mask_tail = (HW % T) != 0

    x_spec = pl.BlockSpec((Nb, Cin, T), lambda n, t: (n, 0, t))
    p1_params = pltpu.CompilerParams(
        dimension_semantics=("parallel", "arbitrary"),           # batch axis shards across TCs (v7x)
        vmem_limit_bytes=_VMEM_LIMIT_BYTES)
    p2_params = pltpu.CompilerParams(
        dimension_semantics=("parallel", "parallel"),
        vmem_limit_bytes=_VMEM_LIMIT_BYTES)

    # ---- Pass 1: per-channel batch statistics (per-batch-block partials) ----
    if use_vpu:
        xsum_p, gram_p = pl.pallas_call(
            _make_stats_kernel_vpu(Cin, HW, T, mask_tail),
            grid=grid,
            in_specs=[x_spec],
            out_specs=(pl.BlockSpec((1, Cin, 1), lambda n, t: (n, 0, 0)),
                       pl.BlockSpec((1, Cin, Cin), lambda n, t: (n, 0, 0))),
            out_shape=(jax.ShapeDtypeStruct((n_n, Cin, 1), jnp.float32),
                       jax.ShapeDtypeStruct((n_n, Cin, Cin), jnp.float32)),
            compiler_params=p1_params,
            cost_estimate=pl.CostEstimate(
                flops=2 * M * (Cin * Cin + Cin), transcendentals=0,
                bytes_accessed=M * Cin * xsz),
        )(x3d)
        s_x = jnp.sum(xsum_p, axis=0)[:, 0]                      # (Cin,)
        gram = jnp.sum(gram_p, axis=0)                           # (Cin, Cin)
        # Tiny (Cout,)-sized fold, done elementwise in f32 (avoids the low-precision matmul path).
        mean = jnp.sum(w_f32 * s_x[None, :], axis=1) / M                      # E[Wx]
        w_g = jnp.sum(w_f32[:, :, None] * gram[None, :, :], axis=1)           # (Cout, Cin) = W @ G
        ex2 = jnp.sum(w_g * w_f32, axis=1) / M                                # diag(W G W^T) / M
        mxu_w = None
    else:
        op_dtype = x_nchw.dtype if x_nchw.dtype == jnp.bfloat16 else jnp.float32
        mxu_w = weight.reshape(Cout, Cin).astype(op_dtype)       # bf16 weights stay native on the MXU
        ysum_p, ysq_p = pl.pallas_call(
            _make_stats_kernel_mxu(Nb, HW, T, mask_tail),
            grid=grid,
            in_specs=[x_spec, pl.BlockSpec((Cout, Cin), lambda n, t: (0, 0))],
            out_specs=(pl.BlockSpec((1, Cout, 1), lambda n, t: (n, 0, 0)),) * 2,
            out_shape=(jax.ShapeDtypeStruct((n_n, Cout, 1), jnp.float32),) * 2,
            compiler_params=p1_params,
            cost_estimate=pl.CostEstimate(
                flops=2 * M * Cin * Cout + 3 * M * Cout, transcendentals=0,
                bytes_accessed=M * Cin * xsz + Cout * Cin * mxu_w.dtype.itemsize),
        )(x3d, mxu_w)
        mean = jnp.sum(ysum_p, axis=0)[:, 0] / M
        ex2 = jnp.sum(ysq_p, axis=0)[:, 0] / M

    # ---- Fold BN statistics into a per-channel affine (all f32) ----
    # TODO(synk): E[y^2]-E[y]^2 can cancel badly when |mean| >> std at very large M; per-block
    # partial sums bound the error, but a mean-shifted / compensated accumulation would be safer.
    var = jnp.maximum(ex2 - mean * mean, 0.0)                    # biased batch variance
    inv = lax.rsqrt(var + BN_EPS)
    scale = gamma.astype(jnp.float32) * inv                      # (Cout,)
    shift = beta.astype(jnp.float32) - mean * scale              # (Cout,)

    # ---- Pass 2: recompute the 1x1 conv per tile and apply scale/shift (lane-dense stores) ----
    # TODO(synk): when Cout < Cin it is cheaper to materialize y in pass 1 and normalize it in
    # place (input_output_aliases) than to re-read x and recompute the conv.
    out_shape = jax.ShapeDtypeStruct((N, Cout, HW), x_nchw.dtype)
    out_spec = pl.BlockSpec((Nb, Cout, T), lambda n, t: (n, 0, t))
    norm_cost = pl.CostEstimate(
        flops=2 * M * Cin * Cout + 2 * M * Cout, transcendentals=0,
        bytes_accessed=M * (Cin + Cout) * xsz)

    if use_vpu:
        w_fold = w_f32 * scale[:, None]                          # (Cout, Cin) f32, BN scale folded in
        out3d = pl.pallas_call(
            _make_norm_kernel_vpu(Cin, Cout),
            grid=grid,
            in_specs=[x_spec,
                      pl.BlockSpec(memory_space=pltpu.MemorySpace.SMEM),
                      pl.BlockSpec(memory_space=pltpu.MemorySpace.SMEM)],
            out_specs=out_spec,
            out_shape=out_shape,
            compiler_params=p2_params,
            cost_estimate=norm_cost,
        )(x3d, w_fold, shift)
    else:
        out3d = pl.pallas_call(
            _make_norm_kernel_mxu(Nb),
            grid=grid,
            in_specs=[x_spec,
                      pl.BlockSpec((Cout, Cin), lambda n, t: (0, 0)),
                      pl.BlockSpec((Cout, 1), lambda n, t: (0, 0)),
                      pl.BlockSpec((Cout, 1), lambda n, t: (0, 0))],
            out_specs=out_spec,
            out_shape=out_shape,
            compiler_params=p2_params,
            cost_estimate=norm_cost,
        )(x3d, mxu_w, scale.reshape(Cout, 1), shift.reshape(Cout, 1))

    return out3d.reshape(N, Cout, H, W)


# --------------------------------------------------------------------------------------
# Pure-JAX reference and self-test
# --------------------------------------------------------------------------------------
def reference(x_nchw, weight, bias, gamma, beta):
    """Pure-JAX reference of Conv2d(1x1, bias=True) + BatchNorm2d (training-mode statistics)."""
    Cout = weight.shape[0]
    xf = x_nchw.astype(jnp.float32)
    w = weight.reshape(Cout, -1).astype(jnp.float32)
    y = jnp.einsum("nchw,oc->nohw", xf, w, precision=lax.Precision.HIGHEST)
    y = y + bias.astype(jnp.float32)[None, :, None, None]
    mean = jnp.mean(y, axis=(0, 2, 3), keepdims=True)
    var = jnp.mean((y - mean) ** 2, axis=(0, 2, 3), keepdims=True)
    out = (y - mean) / jnp.sqrt(var + BN_EPS)
    out = out * gamma.astype(jnp.float32)[None, :, None, None]
    out = out + beta.astype(jnp.float32)[None, :, None, None]
    return out.astype(x_nchw.dtype)


def _make_params(key, n, cin, cout, h, w, dtype):
    kx, kw, kb, kg, ke = jax.random.split(key, 5)
    x = jax.random.normal(kx, (n, cin, h, w), jnp.float32).astype(dtype)
    weight = (0.5 * jax.random.normal(kw, (cout, cin, 1, 1), jnp.float32)).astype(dtype)
    bias = 0.1 * jax.random.normal(kb, (cout,), jnp.float32)
    gamma = 1.0 + 0.1 * jax.random.normal(kg, (cout,), jnp.float32)
    beta = 0.1 * jax.random.normal(ke, (cout,), jnp.float32)
    return x, weight, bias, gamma, beta


if __name__ == "__main__":
    key = jax.random.PRNGKey(0)
    k1, k2 = jax.random.split(key)

    # Case 1: spec-like shapes (tiny Cin -> VPU/Gram path), f32.
    x, weight, bias, gamma, beta = _make_params(k1, 2, 4, 8, 16, 16, jnp.float32)
    out = conv11_op(x, weight, bias, gamma, beta)
    jax.block_until_ready(out)
    ref = reference(x, weight, bias, gamma, beta)
    assert out.shape == (2, 8, 16, 16)
    err = float(jnp.max(jnp.abs(out - ref)))
    assert err < 1e-3, f"VPU path mismatch: {err}"

    # Case 2: wider Cin in bf16 (exercises the MXU path with native-dtype weights).
    x2, weight2, bias2, gamma2, beta2 = _make_params(k2, 2, 32, 16, 8, 8, jnp.bfloat16)
    out2 = conv11_op(x2, weight2, bias2, gamma2, beta2)
    jax.block_until_ready(out2)
    ref2 = reference(x2, weight2, bias2, gamma2, beta2)
    err2 = float(jnp.max(jnp.abs(out2.astype(jnp.float32) - ref2.astype(jnp.float32))))
    assert err2 < 5e-2, f"MXU path mismatch: {err2}"

    print("KERNEL_OK")
</pallas_src>

<mosaic_0001>
module attributes {stable_mosaic.version = 11 : i64} {
  func.func @kernel(%arg0: i32, %arg1: i32, %arg2: memref<1x4x256xf32, #tpu.memory_space<vmem>>, %arg3: memref<1x4x1xf32, #tpu.memory_space<vmem>>, %arg4: memref<1x4x4xf32, #tpu.memory_space<vmem>>) attributes {dimension_semantics = [#tpu.dimension_semantics<parallel>, #tpu.dimension_semantics<arbitrary>], iteration_bounds = array<i64: 2, 1>, scalar_prefetch = 0 : i64, scratch_operands = 0 : i64, tpu.core_type = #tpu.core_type<tc>, window_params = [{transform_indices = @transform_0, window_bounds = array<i64: 1, 4, 256>}, {transform_indices = @transform_1, window_bounds = array<i64: 1, 4, 1>}, {transform_indices = @transform_2, window_bounds = array<i64: 1, 4, 4>}]} {
    %c0_i32 = arith.constant 0 : i32
    %0 = arith.cmpi eq, %arg1, %c0_i32 : i32
    %1 = arith.extui %0 : i1 to i32
    %c0_i32_0 = arith.constant 0 : i32
    %2 = arith.cmpi ne, %1, %c0_i32_0 : i32
    scf.if %2 {
      %cst_24 = arith.constant 0.000000e+00 : f32
      %40 = vector.broadcast %cst_24 : f32 to vector<1x4x1xf32>
      %c0_25 = arith.constant 0 : index
      %c0_26 = arith.constant 0 : index
      %c0_27 = arith.constant 0 : index
      %41 = vector.load %arg3[%c0_25, %c0_26, %c0_27] : memref<1x4x1xf32, #tpu.memory_space<vmem>>, vector<1x4x1xf32>
      tpu.vector_store %arg3[%c0_25, %c0_26, %c0_27], %40 {strides = array<i32>} : memref<1x4x1xf32, #tpu.memory_space<vmem>>, vector<1x4x1xf32>,
      %cst_28 = arith.constant 0.000000e+00 : f32
      %42 = vector.broadcast %cst_28 : f32 to vector<1x4x4xf32>
      %c0_29 = arith.constant 0 : index
      %c0_30 = arith.constant 0 : index
      %c0_31 = arith.constant 0 : index
      %43 = vector.load %arg4[%c0_29, %c0_30, %c0_31] : memref<1x4x4xf32, #tpu.memory_space<vmem>>, vector<1x4x4xf32>
      tpu.vector_store %arg4[%c0_29, %c0_30, %c0_31], %42 {strides = array<i32>} : memref<1x4x4xf32, #tpu.memory_space<vmem>>, vector<1x4x4xf32>,
    } else {
    }
    %c0 = arith.constant 0 : index
    %c0_1 = arith.constant 0 : index
    %c0_2 = arith.constant 0 : index
    %3 = vector.load %arg2[%c0, %c0_1, %c0_2] : memref<1x4x256xf32, #tpu.memory_space<vmem>>, vector<1x4x256xf32>
    %cst = arith.constant dense<0.000000e+00> : vector<4x256xf32>
    %4 = vector.multi_reduction <add>, %3, %cst [0] : vector<1x4x256xf32> to vector<4x256xf32>
    %c0_3 = arith.constant 0 : index
    %c0_4 = arith.constant 0 : index
    %c0_5 = arith.constant 0 : index
    %5 = vector.load %arg3[%c0_3, %c0_4, %c0_5] : memref<1x4x1xf32, #tpu.memory_space<vmem>>, vector<1x4x1xf32>
    %cst_6 = arith.constant dense<0.000000e+00> : vector<4xf32>
    %6 = vector.multi_reduction <add>, %4, %cst_6 [1] : vector<4x256xf32> to vector<4xf32>
    %7 = vector.shape_cast %6 : vector<4xf32> to vector<4x1xf32>
    %8 = vector.shape_cast %7 : vector<4x1xf32> to vector<1x4x1xf32>
    %9 = arith.addf %5, %8 : vector<1x4x1xf32>
    %c0_7 = arith.constant 0 : index
    %c0_8 = arith.constant 0 : index
    %c0_9 = arith.constant 0 : index
    %10 = vector.load %arg3[%c0_7, %c0_8, %c0_9] : memref<1x4x1xf32, #tpu.memory_space<vmem>>, vector<1x4x1xf32>
    tpu.vector_store %arg3[%c0_7, %c0_8, %c0_9], %9 {strides = array<i32>} : memref<1x4x1xf32, #tpu.memory_space<vmem>>, vector<1x4x1xf32>,
    %11 = vector.extract_strided_slice %3 {offsets = [0, 0, 0], sizes = [1, 1, 256], strides = [1, 1, 1]} : vector<1x4x256xf32> to vector<1x1x256xf32>
    %12 = vector.broadcast %11 : vector<1x1x256xf32> to vector<1x4x256xf32>
    %13 = arith.mulf %12, %3 : vector<1x4x256xf32>
    %cst_10 = arith.constant dense<0.000000e+00> : vector<4x256xf32>
    %14 = vector.multi_reduction <add>, %13, %cst_10 [0] : vector<1x4x256xf32> to vector<4x256xf32>
    %cst_11 = arith.constant dense<0.000000e+00> : vector<4xf32>
    %15 = vector.multi_reduction <add>, %14, %cst_11 [1] : vector<4x256xf32> to vector<4xf32>
    %16 = vector.shape_cast %15 : vector<4xf32> to vector<4x1xf32>
    %17 = vector.extract_strided_slice %3 {offsets = [0, 1, 0], sizes = [1, 1, 256], strides = [1, 1, 1]} : vector<1x4x256xf32> to vector<1x1x256xf32>
    %18 = vector.broadcast %17 : vector<1x1x256xf32> to vector<1x4x256xf32>
    %19 = arith.mulf %18, %3 : vector<1x4x256xf32>
    %cst_12 = arith.constant dense<0.000000e+00> : vector<4x256xf32>
    %20 = vector.multi_reduction <add>, %19, %cst_12 [0] : vector<1x4x256xf32> to vector<4x256xf32>
    %cst_13 = arith.constant dense<0.000000e+00> : vector<4xf32>
    %21 = vector.multi_reduction <add>, %20, %cst_13 [1] : vector<4x256xf32> to vector<4xf32>
    %22 = vector.shape_cast %21 : vector<4xf32> to vector<4x1xf32>
    %23 = vector.extract_strided_slice %3 {offsets = [0, 2, 0], sizes = [1, 1, 256], strides = [1, 1, 1]} : vector<1x4x256xf32> to vector<1x1x256xf32>
    %24 = vector.broadcast %23 : vector<1x1x256xf32> to vector<1x4x256xf32>
    %25 = arith.mulf %24, %3 : vector<1x4x256xf32>
    %cst_14 = arith.constant dense<0.000000e+00> : vector<4x256xf32>
    %26 = vector.multi_reduction <add>, %25, %cst_14 [0] : vector<1x4x256xf32> to vector<4x256xf32>
    %cst_15 = arith.constant dense<0.000000e+00> : vector<4xf32>
    %27 = vector.multi_reduction <add>, %26, %cst_15 [1] : vector<4x256xf32> to vector<4xf32>
    %28 = vector.shape_cast %27 : vector<4xf32> to vector<4x1xf32>
    %29 = vector.extract_strided_slice %3 {offsets = [0, 3, 0], sizes = [1, 1, 256], strides = [1, 1, 1]} : vector<1x4x256xf32> to vector<1x1x256xf32>
    %30 = vector.broadcast %29 : vector<1x1x256xf32> to vector<1x4x256xf32>
    %31 = arith.mulf %30, %3 : vector<1x4x256xf32>
    %cst_16 = arith.constant dense<0.000000e+00> : vector<4x256xf32>
    %32 = vector.multi_reduction <add>, %31, %cst_16 [0] : vector<1x4x256xf32> to vector<4x256xf32>
    %cst_17 = arith.constant dense<0.000000e+00> : vector<4xf32>
    %33 = vector.multi_reduction <add>, %32, %cst_17 [1] : vector<4x256xf32> to vector<4xf32>
    %34 = vector.shape_cast %33 : vector<4xf32> to vector<4x1xf32>
    %c0_18 = arith.constant 0 : index
    %c0_19 = arith.constant 0 : index
    %c0_20 = arith.constant 0 : index
    %35 = vector.load %arg4[%c0_18, %c0_19, %c0_20] : memref<1x4x4xf32, #tpu.memory_space<vmem>>, vector<1x4x4xf32>
    %36 = tpu.concatenate %16, %22, %28, %34 in 1 : vector<4x1xf32>, vector<4x1xf32>, vector<4x1xf32>, vector<4x1xf32> -> vector<4x4xf32>
    %37 = vector.shape_cast %36 : vector<4x4xf32> to vector<1x4x4xf32>
    %38 = arith.addf %35, %37 : vector<1x4x4xf32>
    %c0_21 = arith.constant 0 : index
    %c0_22 = arith.constant 0 : index
    %c0_23 = arith.constant 0 : index
    %39 = vector.load %arg4[%c0_21, %c0_22, %c0_23] : memref<1x4x4xf32, #tpu.memory_space<vmem>>, vector<1x4x4xf32>
    tpu.vector_store %arg4[%c0_21, %c0_22, %c0_23], %38 {strides = array<i32>} : memref<1x4x4xf32, #tpu.memory_space<vmem>>, vector<1x4x4xf32>,
    return
  }
  func.func @transform_0(%arg0: i32, %arg1: i32) -> (i32, i32, i32) {
    %c0_i32 = arith.constant 0 : i32
    %c0_i32_0 = arith.constant 0 : i32
    return %arg0, %c0_i32, %arg1 : i32, i32, i32
  }
  func.func @transform_1(%arg0: i32, %arg1: i32) -> (i32, i32, i32) {
    %c0_i32 = arith.constant 0 : i32
    %c0_i32_0 = arith.constant 0 : i32
    %c0_i32_1 = arith.constant 0 : i32
    return %arg0, %c0_i32, %c0_i32_0 : i32, i32, i32
  }
  func.func @transform_2(%arg0: i32, %arg1: i32) -> (i32, i32, i32) {
    %c0_i32 = arith.constant 0 : i32
    %c0_i32_0 = arith.constant 0 : i32
    %c0_i32_1 = arith.constant 0 : i32
    return %arg0, %c0_i32, %c0_i32_0 : i32, i32, i32
  }
}

</mosaic_0001>

<bundles_post_ra>
// kernel: tpu_custom_call.1
= control target key start
LH: loop header
LB: loop body
LE: loop exit
PB: predicated region body
PF: predicated region fallthrough
CT: control target
= control target key end

     0   :  { %8 = vsyncpa [#allocation3], 0  ;;  %s782_s0 = inlined_call_operand.hbm [shape: f32[2,4,256], index: 0, kind: input, shape index: {}]   ;;  %s783_s1 = inlined_call_operand.vmem [shape: f32[2,4,1], index: 1, kind: output, shape index: {0}]   ;;  %s784_s2 = inlined_call_operand.hbm [shape: f32[2,4,4], index: 2, kind: output, shape index: {1}]  }
   0x1   :  { %10 = vsyncpa [#allocation3 + $0x1], 0 }
   0x2   :  { %11 = vsyncpa [#allocation4], 0 }
   0x3   :  { %13 = vsyncpa [#allocation4 + $0x1], 0  ;;  %s644_s9 = smov 0   ;;  %s646_s10 = smov 0  }
   0x4   :  { %s648_s11 = smov 0   ;;  %s650_s12 = smov 0  }
   0x5   :  { %s652_s13 = smov 0   ;;  %s654_s14 = smov 0  }
   0x6 LB: > { %s435_s15 = sadd.s32 4294967295, %s626_s14   ;;  %s436_s16 = sadd.s32 4294967294, %s626_s14   ;;  %s626_s14 = sphi %s654_s14, %s19_s14   ;;  %s622_s13 = sphi %s652_s13, %s793_s13   ;;  %s618_s12 = sphi %s650_s12, %s792_s12   ;;  %s614_s11 = sphi %s648_s11, %s791_s11   ;;  %s610_s10 = sphi %s646_s10, %s790_s10   ;;  %s606_s9 = sphi %s644_s9, %s789_s9  }
   0x7   : > { %s31_s17 = sadd.s32 1, %s622_s13  ;;  %s40_s18 = sadd.s32 1, %s614_s11 }
   0x8   : > { %p33_p0 = scmp.ge.s32.totalorder %s31_s17, 2  ;;  %p47_p1 = scmp.ne.s32.totalorder %s614_s11, %s610_s10 }
   0x9   : > { %p48_p2 = scmp.eq.s32.totalorder %s626_s14, 0  ;;  %p53_p3 = scmp.ne.s32.totalorder %s610_s10, %s606_s9 }
   0xa   : > { %s795_s17 = smov (%p33_p0, %s31_s17), 0  ;;  %p54_p5 = scmp.eq.s32.totalorder %s435_s15, 0 }
   0xb   : > { %p685_p4 = por %p48_p2, %p47_p1  ;;  %s35_s20 = ssub.s32 %s622_s13, %s795_s17 }
   0xc   : > { %p103_p6 = scmp.eq.s32.totalorder %s435_s15, 1  ;;  %p38_p7 = scmp.eq.s32.totalorder %s35_s20, 0 }
   0xd   : > { %p691_p8 = por %p54_p5, %p53_p3  ;;  %p109_p10 = scmp.eq.s32.totalorder %s436_s16, 1 }
   0xe   : > { %p695_p9 = por %p103_p6, %p47_p1  ;;  %p438_p12 = scmp.ge.s32.totalorder %s626_s14, 2 }
   0xf   : > { %s700_s23 = scalar_select %p38_p7, %s614_s11, %s40_s18  }
  0x10   : > { %p702_p11 = por %p109_p10, %p53_p3  ;;  %p463_p13 = scmp.lt.s32.totalorder %s626_s14, 2 }
  0x11   : > { %s129_s25 = sand.u32 1, %s614_s11   ;;  %s450_s27 = sshll.u32 %s622_s13, 3 }
  0x12   : > { %s439_s26 = sshll.u32 %s129_s25, 3  ;;  %s140_s30 = scalar_lea.hbm %s782_s0, %s450_s27 }
  0x13   : > { %s133_s3 = scalar_lea.vmem [#allocation2], %s439_s26  ;;  %s142_s5 = sshll.u32 %s140_s30, 4  ;;  %s143_s5 = int_to_ptr.hbm [resolvable:$true] %s142_s5 }
  0x14   : > { %s144_s4 = sshll.u32 %s133_s3, 4  ;;  %p456_p0 = pnand %p463_p13, %p685_p4  ;;  %s145_s4 = int_to_ptr.vmem [resolvable:$true] %s144_s4 }
  0x15   : > { %p442_p1 = scmp.ge.s32.totalorder %s626_s14, 1  ;;  %p149_p2 = scmp.lt.s32.totalorder %s626_s14, 3 }
  0x16   : > { %s130_s6 = scalar_lea.sflag [#allocation3], %s129_s25 }
  0x17   : > { %458 = dma.hbm_to_vmem [thread:$0]  (!%p456_p0), %s143_s5, 128, %s145_s4, %s130_s6  }
  0x18   : > { %p150_p3 = pnand %p442_p1, %p149_p2 }
  0x19   : > { %s718_s7 = sand.u32 (!%p150_p3), 1, %s610_s10  }
  0x1a   : > { %153 = sbr.rel (%p150_p3) target bundleno = 200 (0xc8), region = 24  ;;  %s443_s8 = sshll.u32 (!%p150_p3), %s718_s7, 3 }
  0x1b   : > { %s156_s15 = scalar_lea.sflag (!%p150_p3), [#allocation3], %s718_s7  ;;  %s159_s16 = scalar_lea.vmem (!%p150_p3), [#allocation2], %s443_s8 }
  0x1f   : > { %597 = dma.done.wait (%p691_p8), %s156_s15, 128  }
  0x20   : > { %599 = vsyncadd (%p691_p8), %s156_s15, 4294967168  ;;  %v198_v0 = vld [vmem:[%s159_s16] sm:$0xff]  ;;  %vm207_vm0 = vcmask 1043456   ;;  %p186_p4 = scmp.lt.s32.totalorder %s618_s12, 1  ;;  %s444_s19 = sshll.u32 %s718_s7, 2  ;;  %vm196_vm1 = vcmask 27648  }
  0x21   : > { %202 = vst [vmem:[#allocation1] ss:$2 sm:$0xff] %v198_v0  ;;  %v217_v3 = vperm.slane %v198_v0, 0  ;;  %v218_v4 = vperm.slane %v198_v0, 4  ;;  %v237_v14 = vperm.slane %v198_v0, 1  ;;  %v238_v15 = vperm.slane %v198_v0, 5 }
  0x22   : > { %v257_v25 = vperm.slane %v198_v0, 2  ;;  %v258_v26 = vperm.slane %v198_v0, 6  ;;  %v277_v36 = vperm.slane %v198_v0, 3  ;;  %v278_v37 = vperm.slane %v198_v0, 7  ;;  %s187_s18 = scalar_select %p186_p4, %s618_s12, 1 }
  0x23   : > { %v221_v5 = vperm.slane %v217_v3, 0  ;;  %v222_v6 = vperm.slane %v218_v4, 0  ;;  %v241_v19 = vperm.slane %v237_v14, 1  ;;  %v242_v20 = vperm.slane %v238_v15, 1  ;;  %s184_s27 = scalar_lea.vmem [#allocation5], %s444_s19  ;;  %s447_s28 = sshll.u32 %s618_s12, 2 }
  0x24   : > { %v261_v30 = vperm.slane %v257_v25, 2  ;;  %v262_v31 = vperm.slane %v258_v26, 2  ;;  %v281_v41 = vperm.slane %v277_v36, 3  ;;  %v282_v42 = vperm.slane %v278_v37, 3  ;;  %s445_s20 = sshll.u32 %s187_s18, 2  ;;  %s325_s3 = scalar_lea.hbm %s784_s2, %s447_s28 }
  0x25   : > { %s189_s26 = scalar_lea.vmem %s783_s1, %s445_s20  ;;  %v628_v50 = vmov 0.0   ;;  %vm194_vm2 = vcmask 3072   ;;  %vm298_vm3 = vcmask 7168   ;;  %vm300_vm4 = vcmask 15360   ;;  %s327_s4 = sshll.u32 %s184_s27, 4  ;;  %s328_s4 = int_to_ptr.vmem [resolvable:$true] %s327_s4 }
  0x26   : > { %197 = vst.msk [vmem:[%s184_s27] sm:$0xf] %vm196_vm1, %v628_v50  ;;  %vm302_vm5 = vcmask 23552   ;;  %s329_s5 = sshll.u32 %s325_s3, 4  ;;  %s312_s12 = scalar_lea.sflag [#allocation4], %s718_s7  ;;  %s330_s5 = int_to_ptr.hbm [resolvable:$true] %s329_s5 }
  0x27   : > { %195 = vst.msk [vmem:[%s189_s26] sm:$0xf] %vm194_vm2, %v628_v50  ;;  %s558_s6 = sshra.s32 %s330_s5, 4  ;;  %s564_s18 = scalar_lea.hbm %s784_s2, 8  ;;  %s559_s6 = int_to_ptr.hbm [resolvable:$true] %s558_s6 }
  0x28   : > { %v203_v1 = vld.sshfl [vmem:[#allocation1] sm:$0xff pattern:$0x75316420]  ;;  %v204_v2 = vld.sshfl [vmem:[#allocation1 + $0x8] sm:$0xff pattern:$0x75316420]  ;;  %p565_p8 = scmp.lt.s32.totalorder %s559_s6, %s784_s2 }
  0x29   : > { %223 = vst [vmem:[#allocation1] ss:$2 sm:$0xff] %v198_v0  ;;  %v208_v7 = vsel %vm207_vm0, %v203_v1, 0.0  ;;  %v209_v8 = vsel %vm207_vm0, %v204_v2, 0.0  ;;  %s560_s8 = scalar_lea.hbm %s559_s6, 4 }
  0x2a   : > { %v210_v9 = vadd.f32 %v209_v8, %v208_v7  ;;  %p561_p5 = scmp.ne.s32.totalorder %s559_s6, %s560_s8  ;;  %p566_p10 = scmp.lt.s32.totalorder %s564_s18, %s560_s8 }
  0x2c   : > { %211 = vadd.xlane.f32.xlu2 %v210_v9  ;;  %p562_p6 = pnand %p561_p5, %p695_p9  ;;  %p567_p13 = por %p566_p10, %p565_p8 }
  0x2d   : > { %v297_v58 = vld [vmem:[%s184_s27] sm:$0xf] }
  0x2e   : > { %v200_v52 = vld [vmem:[%s189_s26] sm:$0xf]  ;;  %p563_p7 = pneg %p562_p6 }
  0x30   : > { %v224_v10 = vld.sshfl [vmem:[#allocation1] sm:$0xff pattern:$0x75316420]  ;;  %v225_v11 = vld.sshfl [vmem:[#allocation1 + $0x8] sm:$0xff pattern:$0x75316420]  ;;  %p568_p0 = pnand %p567_p13, %p563_p7 }
  0x31   : > { %v228_v12 = vmul.f32 %v224_v10, %v221_v5  ;;  %v229_v13 = vmul.f32 %v225_v11, %v222_v6  ;;  %243 = vst [vmem:[#allocation1] ss:$2 sm:$0xff] %v198_v0 }
  0x33   : > { %v232_v16 = vsel %vm207_vm0, %v228_v12, 0.0  ;;  %v233_v17 = vsel %vm207_vm0, %v229_v13, 0.0 }
  0x34   : > { %v234_v18 = vadd.f32 %v233_v17, %v232_v16 }
  0x36   : > { %235 = vadd.xlane.f32.xlu0 %v234_v18 }
  0x38   : > { %v244_v21 = vld.sshfl [vmem:[#allocation1] sm:$0xff pattern:$0x75316420]  ;;  %v245_v22 = vld.sshfl [vmem:[#allocation1 + $0x8] sm:$0xff pattern:$0x75316420] }
  0x39   : > { %v248_v23 = vmul.f32 %v244_v21, %v241_v19  ;;  %v249_v24 = vmul.f32 %v245_v22, %v242_v20  ;;  %263 = vst [vmem:[#allocation1] ss:$2 sm:$0xff] %v198_v0 }
  0x3b   : > { %v252_v27 = vsel %vm207_vm0, %v248_v23, 0.0  ;;  %v253_v28 = vsel %vm207_vm0, %v249_v24, 0.0 }
  0x3c   : > { %v254_v29 = vadd.f32 %v253_v28, %v252_v27 }
  0x3e   : > { %255 = vadd.xlane.f32.xlu0 %v254_v29 }
  0x40   : > { %v264_v32 = vld.sshfl [vmem:[#allocation1] sm:$0xff pattern:$0x75316420]  ;;  %v265_v33 = vld.sshfl [vmem:[#allocation1 + $0x8] sm:$0xff pattern:$0x75316420] }
  0x41   : > { %v268_v34 = vmul.f32 %v264_v32, %v261_v30  ;;  %v269_v35 = vmul.f32 %v265_v33, %v262_v31  ;;  %283 = vst [vmem:[#allocation1] ss:$2 sm:$0xff] %v198_v0 }
  0x43   : > { %v272_v38 = vsel %vm207_vm0, %v268_v34, 0.0  ;;  %v273_v39 = vsel %vm207_vm0, %v269_v35, 0.0 }
  0x44   : > { %v274_v40 = vadd.f32 %v273_v39, %v272_v38 }
  0x46   : > { %275 = vadd.xlane.f32.xlu1 %v274_v40 }
  0x48   : > { %v284_v43 = vld.sshfl [vmem:[#allocation1] sm:$0xff pattern:$0x75316420]  ;;  %v285_v44 = vld.sshfl [vmem:[#allocation1 + $0x8] sm:$0xff pattern:$0x75316420] }
  0x49   : > { %v288_v45 = vmul.f32 %v284_v43, %v281_v41  ;;  %v289_v46 = vmul.f32 %v285_v44, %v282_v42 }
  0x4b   : > { %v292_v47 = vsel %vm207_vm0, %v288_v45, 0.0  ;;  %v293_v48 = vsel %vm207_vm0, %v289_v46, 0.0 }
  0x4c   : > { %v294_v49 = vadd.f32 %v293_v48, %v292_v47 }
  0x4e   : > { %295 = vadd.xlane.f32.xlu1 %v294_v49 }
  0x9f   : > { %v212_v51 = vpop.xlane.xlu2 %211 }
  0xa0   : > { %v213_v53 = vadd.f32 %v212_v51, %v200_v52 }
  0xa2   : > { %215 = vst.msk [vmem:[%s189_s26] sm:$0xf] %vm194_vm2, %v213_v53 }
  0xa9   : > { %v236_v54 = vpop.xlane.xlu0 %235 }
  0xb1   : > { %v256_v56 = vpop.xlane.xlu0 %255 }
  0xb2   : > { %v299_v57 = vsel %vm298_vm3, %v236_v54, %v256_v56 }
  0xb9   : > { %v276_v55 = vpop.xlane.xlu1 %275 }
  0xba   : > { %v301_v59 = vsel %vm300_vm4, %v299_v57, %v276_v55 }
  0xc1   : > { %v296_v60 = vpop.xlane.xlu1 %295 }
  0xc2   : > { %v303_v61 = vsel %vm302_vm5, %v301_v59, %v296_v60 }
  0xc3   : > { %v304_v62 = vadd.f32 %v303_v61, %v297_v58 }
  0xc5   : > { %306 = vst.msk [vmem:[%s184_s27] sm:$0xf] %vm196_vm1, %v304_v62 }
  0xc6   : > { %571 = shalt.err (!%p568_p0)
}
  0xc7   : > { %453 = dma.vmem_to_hbm [thread:$0]  (%p695_p9), %s328_s4, 64, %s330_s5, %s312_s12  }
  0xc8 PF: > { %s348_s7 = sand.u32 1, %s606_s9   ;;  %p460_p1 = pnand %p438_p12, %p702_p11 }
  0xc9   : > { %s349_s21 = scalar_lea.sflag [#allocation4], %s348_s7 }
  0xca   : > { %p461_p2 = pneg %p460_p1 }
  0xcc   : > { %601 = dma.done.wait (%p461_p2), %s349_s21, 64  }
  0xcd   : > { %603 = vsyncadd (%p461_p2), %s349_s21, 4294967232  ;;  %s19_s14 = sadd.s32 1, %s626_s14   ;;  %s789_s9 = smov %s610_s10 }
  0xce   : > { %p16_p3 = scmp.ge.s32.totalorder %s19_s14, 4   ;;  %s790_s10 = smov %s614_s11 }
  0xcf   : > { %s791_s11 = smov %s700_s23  ;;  %s792_s12 = smov %s622_s13 }
  0xd0   : > { %s793_s13 = smov %s795_s17  ;;  %18 = sbr.rel (!%p16_p3) target bundleno = 6 (0x6), region = 85 }
  0xd5   :  { %355 = vsyncpa [#allocation3], 1 }
  0xd6   :  { %357 = vsyncpa [#allocation3 + $0x1], 1 }
  0xd7   :  { %358 = vsyncpa [#allocation4], 1 }
  0xd8   :  { %360 = vsyncpa [#allocation4 + $0x1], 1 }

</bundles_post_ra>
